<compile_context>
chip_gen: v7x
topology: tpu7x:2x2x1
jax: 0.10.0
libtpu: 0.0.40
codegen_flags: <defaults>
</compile_context>

<pallas_src>
import functools
import math

import jax
import jax.numpy as jnp
import numpy as np
from jax import lax
from jax.experimental import pallas as pl
from jax.experimental.pallas import tpu as pltpu

BN_EPS = 1e-5
NORM_EPS = 1e-12
LANE = 128
SUB_BF16 = 16          # bf16 sublane pack granularity


def _round_up(x, m):
    return ((x + m - 1) // m) * m


# ----------------------------------------------------------------------------
# Kernel
# ----------------------------------------------------------------------------
def godin_head_kernel(feat_ref, wcat_hbm, bg_ref, gamma_ref, beta_ref,
                      f_ref, h_ref,
                      pooled_acc, wcat_vmem, wsem, *, inv_hw, k_pad):
    step = pl.program_id(0)
    wcopy = pltpu.make_async_copy(wcat_hbm, wcat_vmem, wsem)

    @pl.when(step == 0)
    def _():
        pooled_acc[...] = jnp.zeros_like(pooled_acc)
        # Kick the weight DMA off the critical path: it rides under the
        # bandwidth-bound feature stream and is only waited on in the epilogue.
        wcopy.start()

    # Stream the spatial tiles (bf16, channels on the lane axis) and accumulate the
    # global-average-pool SUM in an f32 VMEM scratch.
    pooled_acc[...] += jnp.sum(feat_ref[...].astype(jnp.float32), axis=1)

    @pl.when(step == pl.num_programs(0) - 1)
    def _():
        wcopy.wait()
        pooled = pooled_acc[...] * inv_hw                         # [N, C]  (mean)

        # Fused MXU pass: [N, C] @ [C, 2*K_pad]  (H_C weights || G_I weights).
        logits = jnp.dot(pooled, wcat_vmem[...],
                         preferred_element_type=jnp.float32)
        logits_h = logits[:, :k_pad]                              # 1/||w|| already folded
        z = logits[:, k_pad:] + bg_ref[...]                       # G_I linear

        # ---- H = H_C : cosine-similarity head -----------------------------
        inv_fnorm = lax.rsqrt(
            jnp.sum(pooled * pooled, axis=1, keepdims=True) + NORM_EPS)
        h = logits_h * inv_fnorm

        # ---- G = G_I : BatchNorm1d (training / batch stats) + sigmoid -----
        mu = jnp.mean(z, axis=0, keepdims=True)
        zc = z - mu
        var = jnp.mean(zc * zc, axis=0, keepdims=True)            # biased variance
        zn = zc * lax.rsqrt(var + BN_EPS)
        g = jax.nn.sigmoid(gamma_ref[...] * zn + beta_ref[...])

        # ---- GODIN output: f = h / g (exact divide; epilogue runs once) ----
        f_ref[...] = h / g
        h_ref[...] = h


# ----------------------------------------------------------------------------
# Wrapper
# ----------------------------------------------------------------------------
def _vmem_limit_bytes():
    try:
        cap = int(pltpu.get_tpu_info().vmem_capacity_bytes)
    except Exception:
        cap = 64 << 20                       # conservative fallback (v7x per-TC VMEM)
    # Leave headroom for compiler scratch; cap at 96 MiB on 128 MiB parts.
    return min(max((cap * 3) // 4, 16 << 20), 96 << 20)


def godin_head(feat, params, *, t_hw=None):
    """feat: [N, HW, C] channels-last backbone feature map (bf16 preferred)."""
    N, HW, C = feat.shape
    if feat.dtype != jnp.bfloat16:
        feat = feat.astype(jnp.bfloat16)
    K = params["w_h"].shape[0]
    K_pad = _round_up(max(K, LANE), LANE)

    # --- weight prep (plain JAX, data-independent of the batch) -------------
    w_h = params["w_h"].astype(jnp.float32)                       # [K, C]
    wnorm = jnp.sqrt(jnp.sum(w_h * w_h, axis=1, keepdims=True))   # [K, 1]
    wht = (w_h / jnp.maximum(wnorm, NORM_EPS)).T                  # [C, K], 1/||w|| folded
    wgt = params["w_g"].astype(jnp.float32).T                     # [C, K]

    def pad_k(a, value=0.0):
        return jnp.pad(a, ((0, 0), (0, K_pad - K)), constant_values=value)

    wcat = jnp.concatenate([pad_k(wht), pad_k(wgt)], axis=1)      # [C, 2*K_pad]
    bg = pad_k(params["b_g"].reshape(1, K))
    gamma = pad_k(params["bn_gamma"].reshape(1, K), 1.0)          # padded lanes stay finite
    beta = pad_k(params["bn_beta"].reshape(1, K))

    vmem_limit = _vmem_limit_bytes()

    # --- spatial tiling ------------------------------------------------------
    hw16 = _round_up(HW, SUB_BF16)
    if t_hw is None:
        # Budget: resident weight scratch + pooled acc + small residents + margin,
        # remainder split across the TWO pipeline buffers of the bf16 feat stream.
        resident = C * 2 * K_pad * 4 + _round_up(N, 8) * C * 4 + (4 << 20)
        avail = max(vmem_limit - resident, 2 << 20)
        per_row = N * C * 2                                        # bf16 bytes / spatial row
        t_hw = ((avail // 2) // max(per_row, 1)) // SUB_BF16 * SUB_BF16
        t_hw = max(SUB_BF16, t_hw)
    t_hw = max(SUB_BF16, _round_up(min(int(t_hw), hw16), SUB_BF16))
    n_steps = -(-hw16 // t_hw)
    # Rebalance so padded traffic is < 16 rows per step, never up to a full tile.
    t_hw = _round_up(-(-hw16 // n_steps), SUB_BF16)
    HW_pad = t_hw * n_steps
    if HW_pad != HW:
        # zero-padding the spatial axis leaves the pooled SUM unchanged;
        # the mean divides by the true HW inside the kernel.
        feat = jnp.pad(feat, ((0, 0), (0, HW_pad - HW), (0, 0)))

    kernel = functools.partial(godin_head_kernel, inv_hw=1.0 / HW, k_pad=K_pad)

    feat_bytes = N * HW_pad * C * 2
    w_bytes = C * 2 * K_pad * 4
    out_bytes = 2 * N * K_pad * 4
    cost = pl.CostEstimate(
        flops=2 * N * C * 2 * K_pad + N * HW_pad * C,
        transcendentals=3 * N * K_pad,
        bytes_accessed=feat_bytes + w_bytes + out_bytes + 3 * K_pad * 4)

    f, h = pl.pallas_call(
        kernel,
        out_shape=(jax.ShapeDtypeStruct((N, K_pad), jnp.float32),
                   jax.ShapeDtypeStruct((N, K_pad), jnp.float32)),
        grid_spec=pltpu.PrefetchScalarGridSpec(
            num_scalar_prefetch=0,
            grid=(n_steps,),
            in_specs=[pl.BlockSpec((N, t_hw, C), lambda s: (0, s, 0)),
                      pl.BlockSpec(memory_space=pl.ANY),          # wcat stays in HBM
                      pl.BlockSpec((1, K_pad), lambda s: (0, 0)),
                      pl.BlockSpec((1, K_pad), lambda s: (0, 0)),
                      pl.BlockSpec((1, K_pad), lambda s: (0, 0))],
            out_specs=(pl.BlockSpec((N, K_pad), lambda s: (0, 0)),
                       pl.BlockSpec((N, K_pad), lambda s: (0, 0))),
            scratch_shapes=[pltpu.VMEM((N, C), jnp.float32),          # pooled sum
                            pltpu.VMEM((C, 2 * K_pad), jnp.float32),  # weight landing buf
                            pltpu.SemaphoreType.DMA(())]),
        compiler_params=pltpu.CompilerParams(
            dimension_semantics=("arbitrary",),          # reduction axis
            vmem_limit_bytes=vmem_limit),
        cost_estimate=cost,
    )(feat, wcat, bg, gamma, beta)

    return f[:, :K], h[:, :K]


def backbone_stem(x, params):
    # Synthetic backbone stem (see TODO(synk)): conv 3x3 SAME + ReLU, emitted
    # channels-last and cast to bf16 so the kernel streams lane-dense, half-width
    # features with no transpose.
    feat = lax.conv_general_dilated(
        x, params["conv_w"], window_strides=(1, 1), padding="SAME",
        dimension_numbers=("NCHW", "OIHW", "NHWC"))
    feat = jnp.maximum(feat + params["conv_b"][None, None, None, :], 0.0)
    N, H, W, C = feat.shape
    return feat.reshape(N, H * W, C).astype(jnp.bfloat16)


def godin_forward(x, params, *, t_hw=None):
    return godin_head(backbone_stem(x, params), params, t_hw=t_hw)


# ----------------------------------------------------------------------------
# Plain-JAX reference (for the correctness check only; same bf16 features)
# ----------------------------------------------------------------------------
def godin_reference(x, params):
    feat = backbone_stem(x, params).astype(jnp.float32)
    pooled = jnp.mean(feat, axis=1)
    w_h, w_g = params["w_h"], params["w_g"]
    fnorm = jnp.linalg.norm(pooled, axis=1, keepdims=True)
    wnorm = jnp.linalg.norm(w_h, axis=1, keepdims=True).T
    h = (pooled @ w_h.T) / (wnorm * fnorm)
    z = pooled @ w_g.T + params["b_g"][None, :]
    mu = jnp.mean(z, axis=0, keepdims=True)
    var = jnp.mean((z - mu) ** 2, axis=0, keepdims=True)
    zn = (z - mu) / jnp.sqrt(var + BN_EPS)
    g = jax.nn.sigmoid(params["bn_gamma"][None, :] * zn + params["bn_beta"][None, :])
    return h / g, h


def init_params(key, n_channels, num_classes):
    k = jax.random.split(key, 5)
    bound = math.sqrt(3.0 / n_channels)
    conv_bound = 1.0 / math.sqrt(3 * 3 * 3)
    return {
        # synthetic backbone stem
        "conv_w": jax.random.uniform(k[0], (n_channels, 3, 3, 3), jnp.float32,
                                     -conv_bound, conv_bound),
        "conv_b": jax.random.uniform(k[1], (n_channels,), jnp.float32,
                                     -conv_bound, conv_bound),
        # H_C head: weights [num_classes, nChannels]
        "w_h": jax.random.uniform(k[2], (num_classes, n_channels), jnp.float32,
                                  -bound, bound),
        # G_I head: weights [num_classes, nChannels], bias, BN affine
        "w_g": jax.random.uniform(k[3], (num_classes, n_channels), jnp.float32,
                                  -bound, bound),
        "b_g": jax.random.uniform(k[4], (num_classes,), jnp.float32,
                                  -bound, bound),
        "bn_gamma": jnp.ones((num_classes,), jnp.float32),
        "bn_beta": jnp.zeros((num_classes,), jnp.float32),
    }


if __name__ == "__main__":
    N, C_IN, IMG = 2, 3, 16          # small image batch
    N_CHANNELS = 32                  # stands in for pmodel.fc.in_features
    NUM_CLASSES = 10

    key = jax.random.PRNGKey(0)
    k_x, k_p = jax.random.split(key)
    x = jax.random.normal(k_x, (N, C_IN, IMG, IMG), jnp.float32)
    params = init_params(k_p, N_CHANNELS, NUM_CLASSES)

    # t_hw=64 -> 4 grid steps over the 256-element spatial axis, exercising the
    # streamed / accumulated pooling path plus the deferred weight DMA.
    fwd = jax.jit(functools.partial(godin_forward, t_hw=64))
    f, h = fwd(x, params)
    jax.block_until_ready((f, h))
    assert f.shape == (N, NUM_CLASSES) and h.shape == (N, NUM_CLASSES)

    f_ref, h_ref = jax.jit(godin_reference)(x, params)
    np.testing.assert_allclose(np.asarray(h), np.asarray(h_ref), rtol=1e-4, atol=1e-5)
    np.testing.assert_allclose(np.asarray(f), np.asarray(f_ref), rtol=5e-4, atol=1e-5)

    # Also exercise the auto-tiling (single-step) path.
    f2, h2 = jax.jit(godin_forward)(x, params)
    jax.block_until_ready((f2, h2))
    np.testing.assert_allclose(np.asarray(h2), np.asarray(h_ref), rtol=1e-4, atol=1e-5)

    print("KERNEL_OK")
</pallas_src>

<mosaic_0001>
module attributes {stable_mosaic.version = 11 : i64} {
  func.func @godin_head_kernel(%arg0: i32, %arg1: memref<2x64x32xbf16, #tpu.memory_space<vmem>>, %arg2: memref<32x256xf32, #tpu.memory_space<any>>, %arg3: memref<1x128xf32, #tpu.memory_space<vmem>>, %arg4: memref<1x128xf32, #tpu.memory_space<vmem>>, %arg5: memref<1x128xf32, #tpu.memory_space<vmem>>, %arg6: memref<2x128xf32, #tpu.memory_space<vmem>>, %arg7: memref<2x128xf32, #tpu.memory_space<vmem>>, %arg8: memref<2x32xf32, #tpu.memory_space<vmem>>, %arg9: memref<32x256xf32, #tpu.memory_space<vmem>>, %arg10: memref<!tpu.dma_semaphore, #tpu.memory_space<semaphore_mem>>) attributes {dimension_semantics = [#tpu.dimension_semantics<arbitrary>], iteration_bounds = array<i64: 4>, scalar_prefetch = 0 : i64, scratch_operands = 3 : i64, tpu.core_type = #tpu.core_type<tc>, window_params = [{transform_indices = @transform_0, window_bounds = array<i64: 2, 64, 32>}, {}, {pipeline_mode = #tpu.pipeline_mode<synchronous>, transform_indices = @transform_2, window_bounds = array<i64: 1, 128>}, {pipeline_mode = #tpu.pipeline_mode<synchronous>, transform_indices = @transform_3, window_bounds = array<i64: 1, 128>}, {pipeline_mode = #tpu.pipeline_mode<synchronous>, transform_indices = @transform_4, window_bounds = array<i64: 1, 128>}, {pipeline_mode = #tpu.pipeline_mode<synchronous>, transform_indices = @transform_5, window_bounds = array<i64: 2, 128>}, {pipeline_mode = #tpu.pipeline_mode<synchronous>, transform_indices = @transform_6, window_bounds = array<i64: 2, 128>}]} {
    %c0_i32 = arith.constant 0 : i32
    %0 = arith.cmpi eq, %arg0, %c0_i32 : i32
    %1 = arith.extui %0 : i1 to i32
    %c0_i32_0 = arith.constant 0 : i32
    %2 = arith.cmpi ne, %1, %c0_i32_0 : i32
    scf.if %2 {
      %cst_8 = arith.constant 0.000000e+00 : f32
      %12 = vector.broadcast %cst_8 : f32 to vector<2x32xf32>
      %c0_9 = arith.constant 0 : index
      %c0_10 = arith.constant 0 : index
      %13 = vector.load %arg8[%c0_9, %c0_10] : memref<2x32xf32, #tpu.memory_space<vmem>>, vector<2x32xf32>
      tpu.vector_store %arg8[%c0_9, %c0_10], %12 {strides = array<i32>} : memref<2x32xf32, #tpu.memory_space<vmem>>, vector<2x32xf32>,
      tpu.enqueue_dma source(%arg2 : memref<32x256xf32, #tpu.memory_space<any>>) target(%arg9 : memref<32x256xf32, #tpu.memory_space<vmem>>) target_semaphore(%arg10 : memref<!tpu.dma_semaphore, #tpu.memory_space<semaphore_mem>>)
    } else {
    }
    %c0 = arith.constant 0 : index
    %c0_1 = arith.constant 0 : index
    %3 = vector.load %arg8[%c0, %c0_1] : memref<2x32xf32, #tpu.memory_space<vmem>>, vector<2x32xf32>
    %c0_2 = arith.constant 0 : index
    %c0_3 = arith.constant 0 : index
    %c0_4 = arith.constant 0 : index
    %4 = vector.load %arg1[%c0_2, %c0_3, %c0_4] : memref<2x64x32xbf16, #tpu.memory_space<vmem>>, vector<2x64x32xbf16>
    %5 = arith.extf %4 : vector<2x64x32xbf16> to vector<2x64x32xf32>
    %cst = arith.constant dense<0.000000e+00> : vector<2x32xf32>
    %6 = vector.multi_reduction <add>, %5, %cst [1] : vector<2x64x32xf32> to vector<2x32xf32>
    %7 = arith.addf %3, %6 : vector<2x32xf32>
    %c0_5 = arith.constant 0 : index
    %c0_6 = arith.constant 0 : index
    %8 = vector.load %arg8[%c0_5, %c0_6] : memref<2x32xf32, #tpu.memory_space<vmem>>, vector<2x32xf32>
    tpu.vector_store %arg8[%c0_5, %c0_6], %7 {strides = array<i32>} : memref<2x32xf32, #tpu.memory_space<vmem>>, vector<2x32xf32>,
    %c3_i32 = arith.constant 3 : i32
    %9 = arith.cmpi eq, %arg0, %c3_i32 : i32
    %10 = arith.extui %9 : i1 to i32
    %c0_i32_7 = arith.constant 0 : i32
    %11 = arith.cmpi ne, %10, %c0_i32_7 : i32
    scf.if %11 {
      tpu.wait_dma2 semaphore(%arg10 : memref<!tpu.dma_semaphore, #tpu.memory_space<semaphore_mem>>) src(%arg2 : memref<32x256xf32, #tpu.memory_space<any>>) dst(%arg9 : memref<32x256xf32, #tpu.memory_space<vmem>>)
      %c0_8 = arith.constant 0 : index
      %c0_9 = arith.constant 0 : index
      %12 = vector.load %arg8[%c0_8, %c0_9] : memref<2x32xf32, #tpu.memory_space<vmem>>, vector<2x32xf32>
      %cst_10 = arith.constant 3.906250e-03 : f32
      %13 = vector.broadcast %cst_10 : f32 to vector<2x32xf32>
      %14 = arith.mulf %12, %13 : vector<2x32xf32>
      %c0_11 = arith.constant 0 : index
      %c0_12 = arith.constant 0 : index
      %15 = vector.load %arg9[%c0_11, %c0_12] : memref<32x256xf32, #tpu.memory_space<vmem>>, vector<32x256xf32>
      %cst_13 = arith.constant dense<0.000000e+00> : vector<2x256xf32>
      %16 = tpu.matmul %14, %15, %cst_13 {dimension_numbers = #tpu.dot_dimension_numbers<[1], [0], [0], [1], [0, 0, 1, 1], [], []>} : vector<2x32xf32>, vector<32x256xf32>, vector<2x256xf32> -> vector<2x256xf32>
      %17 = vector.extract_strided_slice %16 {offsets = [0, 0], sizes = [2, 128], strides = [1, 1]} : vector<2x256xf32> to vector<2x128xf32>
      %18 = vector.extract_strided_slice %16 {offsets = [0, 128], sizes = [2, 128], strides = [1, 1]} : vector<2x256xf32> to vector<2x128xf32>
      %c0_14 = arith.constant 0 : index
      %c0_15 = arith.constant 0 : index
      %19 = vector.load %arg3[%c0_14, %c0_15] : memref<1x128xf32, #tpu.memory_space<vmem>>, vector<1x128xf32>
      %20 = vector.broadcast %19 : vector<1x128xf32> to vector<2x128xf32>
      %21 = arith.addf %18, %20 : vector<2x128xf32>
      %22 = arith.mulf %14, %14 : vector<2x32xf32>
      %cst_16 = arith.constant dense<0.000000e+00> : vector<2xf32>
      %23 = vector.multi_reduction <add>, %22, %cst_16 [1] : vector<2x32xf32> to vector<2xf32>
      %24 = vector.shape_cast %23 : vector<2xf32> to vector<2x1xf32>
      %cst_17 = arith.constant 9.99999996E-13 : f32
      %25 = vector.broadcast %cst_17 : f32 to vector<2x1xf32>
      %26 = arith.addf %24, %25 : vector<2x1xf32>
      %27 = math.rsqrt %26 : vector<2x1xf32>
      %28 = vector.broadcast %27 : vector<2x1xf32> to vector<2x128xf32>
      %29 = arith.mulf %17, %28 : vector<2x128xf32>
      %cst_18 = arith.constant dense<0.000000e+00> : vector<128xf32>
      %30 = vector.multi_reduction <add>, %21, %cst_18 [0] : vector<2x128xf32> to vector<128xf32>
      %31 = vector.shape_cast %30 : vector<128xf32> to vector<1x128xf32>
      %cst_19 = arith.constant 2.000000e+00 : f32
      %32 = vector.broadcast %cst_19 : f32 to vector<1x128xf32>
      %33 = arith.divf %31, %32 : vector<1x128xf32>
      %34 = vector.broadcast %33 : vector<1x128xf32> to vector<2x128xf32>
      %35 = arith.subf %21, %34 : vector<2x128xf32>
      %36 = arith.mulf %35, %35 : vector<2x128xf32>
      %cst_20 = arith.constant dense<0.000000e+00> : vector<128xf32>
      %37 = vector.multi_reduction <add>, %36, %cst_20 [0] : vector<2x128xf32> to vector<128xf32>
      %38 = vector.shape_cast %37 : vector<128xf32> to vector<1x128xf32>
      %cst_21 = arith.constant 2.000000e+00 : f32
      %39 = vector.broadcast %cst_21 : f32 to vector<1x128xf32>
      %40 = arith.divf %38, %39 : vector<1x128xf32>
      %cst_22 = arith.constant 9.99999974E-6 : f32
      %41 = vector.broadcast %cst_22 : f32 to vector<1x128xf32>
      %42 = arith.addf %40, %41 : vector<1x128xf32>
      %43 = math.rsqrt %42 : vector<1x128xf32>
      %44 = vector.broadcast %43 : vector<1x128xf32> to vector<2x128xf32>
      %45 = arith.mulf %35, %44 : vector<2x128xf32>
      %c0_23 = arith.constant 0 : index
      %c0_24 = arith.constant 0 : index
      %46 = vector.load %arg4[%c0_23, %c0_24] : memref<1x128xf32, #tpu.memory_space<vmem>>, vector<1x128xf32>
      %47 = vector.broadcast %46 : vector<1x128xf32> to vector<2x128xf32>
      %48 = arith.mulf %47, %45 : vector<2x128xf32>
      %c0_25 = arith.constant 0 : index
      %c0_26 = arith.constant 0 : index
      %49 = vector.load %arg5[%c0_25, %c0_26] : memref<1x128xf32, #tpu.memory_space<vmem>>, vector<1x128xf32>
      %50 = vector.broadcast %49 : vector<1x128xf32> to vector<2x128xf32>
      %51 = arith.addf %48, %50 : vector<2x128xf32>
      %52 = arith.negf %51 : vector<2x128xf32>
      %53 = math.exp %52 : vector<2x128xf32>
      %cst_27 = arith.constant 1.000000e+00 : f32
      %54 = vector.broadcast %cst_27 : f32 to vector<2x128xf32>
      %55 = arith.addf %54, %53 : vector<2x128xf32>
      %56 = arith.divf %54, %55 : vector<2x128xf32>
      %57 = arith.divf %29, %56 : vector<2x128xf32>
      %c0_28 = arith.constant 0 : index
      %c0_29 = arith.constant 0 : index
      %58 = vector.load %arg6[%c0_28, %c0_29] : memref<2x128xf32, #tpu.memory_space<vmem>>, vector<2x128xf32>
      tpu.vector_store %arg6[%c0_28, %c0_29], %57 {strides = array<i32>} : memref<2x128xf32, #tpu.memory_space<vmem>>, vector<2x128xf32>,
      %c0_30 = arith.constant 0 : index
      %c0_31 = arith.constant 0 : index
      %59 = vector.load %arg7[%c0_30, %c0_31] : memref<2x128xf32, #tpu.memory_space<vmem>>, vector<2x128xf32>
      tpu.vector_store %arg7[%c0_30, %c0_31], %29 {strides = array<i32>} : memref<2x128xf32, #tpu.memory_space<vmem>>, vector<2x128xf32>,
    } else {
    }
    return
  }
  func.func @transform_0(%arg0: i32) -> (i32, i32, i32) {
    %c0_i32 = arith.constant 0 : i32
    %c0_i32_0 = arith.constant 0 : i32
    %c0_i32_1 = arith.constant 0 : i32
    return %c0_i32, %arg0, %c0_i32_0 : i32, i32, i32
  }
  func.func @transform_2(%arg0: i32) -> (i32, i32) {
    %c0_i32 = arith.constant 0 : i32
    %c0_i32_0 = arith.constant 0 : i32
    %c0_i32_1 = arith.constant 0 : i32
    return %c0_i32, %c0_i32_0 : i32, i32
  }
  func.func @transform_3(%arg0: i32) -> (i32, i32) {
    %c0_i32 = arith.constant 0 : i32
    %c0_i32_0 = arith.constant 0 : i32
    %c0_i32_1 = arith.constant 0 : i32
    return %c0_i32, %c0_i32_0 : i32, i32
  }
  func.func @transform_4(%arg0: i32) -> (i32, i32) {
    %c0_i32 = arith.constant 0 : i32
    %c0_i32_0 = arith.constant 0 : i32
    %c0_i32_1 = arith.constant 0 : i32
    return %c0_i32, %c0_i32_0 : i32, i32
  }
  func.func @transform_5(%arg0: i32) -> (i32, i32) {
    %c0_i32 = arith.constant 0 : i32
    %c0_i32_0 = arith.constant 0 : i32
    %c0_i32_1 = arith.constant 0 : i32
    return %c0_i32, %c0_i32_0 : i32, i32
  }
  func.func @transform_6(%arg0: i32) -> (i32, i32) {
    %c0_i32 = arith.constant 0 : i32
    %c0_i32_0 = arith.constant 0 : i32
    %c0_i32_1 = arith.constant 0 : i32
    return %c0_i32, %c0_i32_0 : i32, i32
  }
}

</mosaic_0001>

<bundles_post_ra>
// kernel: godin_forward.1
= control target key start
LH: loop header
LB: loop body
LE: loop exit
PB: predicated region body
PF: predicated region fallthrough
CT: control target
= control target key end

     0   :  { %12 = vsyncpa [#allocation7], 0  ;;  %s1107_s0 = inlined_call_operand.vmem [shape: bf16[2,256,32], index: 0, kind: input, shape index: {}]   ;;  %s1108_s1 = inlined_call_operand.vmem [shape: f32[32,256], index: 1, kind: input, shape index: {}]   ;;  %s1109_s2 = inlined_call_operand.vmem [shape: f32[1,128], index: 2, kind: input, shape index: {}]   ;;  %s1110_s3 = inlined_call_operand.vmem [shape: f32[1,128], index: 3, kind: input, shape index: {}]   ;;  %s1111_s4 = inlined_call_operand.vmem [shape: f32[1,128], index: 4, kind: input, shape index: {}]   ;;  %s1112_s5 = inlined_call_operand.hbm [shape: f32[2,128], index: 5, kind: output, shape index: {0}]   ;;  %s1113_s6 = inlined_call_operand.hbm [shape: f32[2,128], index: 6, kind: output, shape index: {1}]  }
   0x1   :  { %13 = vsyncpa [#allocation9], 0  ;;  %s949_s21 = smov 0   ;;  %s951_s22 = smov 0  }
   0x2   :  { %s953_s23 = smov 0  }
   0x3 LB: > { %s965_s24 = sadd.s32 4294967295, %s908_s23   ;;  %s968_s25 = sadd.s32 1, %s908_s23   ;;  %s908_s23 = sphi %s953_s23, %s1116_s23   ;;  %s904_s22 = sphi %s951_s22, %s1115_s22   ;;  %s900_s21 = sphi %s949_s21, %s1114_s21  }
   0x4   : > { %s23_s26 = ssub.s32 %s908_s23, %s968_s25  ;;  %s26_s27 = sadd.s32 1, %s904_s22 }
   0x5   : > { %p24_p0 = scmp.eq.s32.totalorder %s23_s26, 0  ;;  %p33_p1 = scmp.ne.s32.totalorder %s904_s22, %s900_s21 }
   0x6   : > { %p34_p2 = scmp.eq.s32.totalorder %s908_s23, 0  ;;  %p706_p4 = scmp.ge.s32.totalorder %s908_s23, 4 }
   0x7   : > { %s977_s28 = scalar_select %p24_p0, %s904_s22, %s26_s27  }
   0x8   : > { %p35_p3 = por %p34_p2, %p33_p1  ;;  %173 = sbr.rel (%p706_p4) target bundleno = 23 (0x17), region = 28 }
   0xf   : > { %176 = sbr.rel (!%p35_p3) target bundleno = 23 (0x17), region = 32  ;;  %s178_s29 = sand.u32 (%p35_p3), 1, %s904_s22  }
  0x10   : > { %s726_s30 = sshll.u32 (%p35_p3), %s908_s23, 5  ;;  %s707_s7 = sshll.u32 (%p35_p3), %s178_s29, 6 }
  0x11   : > { %s183_s10 = scalar_lea.vmem (%p35_p3), %s1107_s0, %s726_s30  ;;  %s180_s11 = scalar_lea.vmem (%p35_p3), [#allocation5], %s707_s7 }
  0x12   : > { %v199_v0 = vld [vmem:[%s183_s10] sm:$0xff] (%p35_p3)   ;;  %v203_v1 = vld [vmem:[%s183_s10 + $0x8] sm:$0xff] (%p35_p3)   ;;  %v207_v2 = vld [vmem:[%s183_s10 + $0x10] sm:$0xff] (%p35_p3)  }
  0x13   : > { %200 = vst [vmem:[%s180_s11] sm:$0xff] (%p35_p3), %v199_v0   ;;  %204 = vst [vmem:[%s180_s11 + $0x8] sm:$0xff] (%p35_p3), %v203_v1   ;;  %v211_v3 = vld [vmem:[%s183_s10 + $0x18] sm:$0xff] (%p35_p3)   ;;  %v215_v4 = vld [vmem:[%s183_s10 + $0x80] sm:$0xff] (%p35_p3)  }
  0x14   : > { %208 = vst [vmem:[%s180_s11 + $0x10] sm:$0xff] (%p35_p3), %v207_v2   ;;  %v219_v5 = vld [vmem:[%s183_s10 + $0x88] sm:$0xff] (%p35_p3)   ;;  %212 = vst [vmem:[%s180_s11 + $0x18] sm:$0xff] (%p35_p3), %v211_v3   ;;  %v223_v6 = vld [vmem:[%s183_s10 + $0x90] sm:$0xff] (%p35_p3)  }
  0x15   : > { %216 = vst [vmem:[%s180_s11 + $0x20] sm:$0xff] (%p35_p3), %v215_v4   ;;  %220 = vst [vmem:[%s180_s11 + $0x28] sm:$0xff] (%p35_p3), %v219_v5   ;;  %v227_v7 = vld [vmem:[%s183_s10 + $0x98] sm:$0xff] (%p35_p3)  }
  0x16   : > { %224 = vst [vmem:[%s180_s11 + $0x30] sm:$0xff] %v223_v6   ;;  %228 = vst [vmem:[%s180_s11 + $0x38] sm:$0xff] %v227_v7  }
  0x17 PF: > { %p710_p5 = scmp.ge.s32.totalorder %s908_s23, 1  ;;  %p284_p6 = scmp.lt.s32.totalorder %s908_s23, 5 }
  0x19   : > { %p285_p7 = pnand %p710_p5, %p284_p6 }
  0x1a   : > { %s291_s12 = sand.u32 (!%p285_p7), 1, %s900_s21   ;;  %p712_p8 = scmp.ne.s32.totalorder (!%p285_p7), %s965_s24, 0 }
  0x1b   : > { %288 = sbr.rel (%p285_p7) target bundleno = 446 (0x1be), region = 73  ;;  %s711_s13 = sshll.u32 (!%p285_p7), %s291_s12, 6 }
  0x1c   : > { %s988_s14 = scalar_lea.vmem (!%p285_p7), [#allocation5], %s711_s13 }
  0x22   : > { %317 = sbr.rel (%p712_p8) target bundleno = 42 (0x2a), region = 81  ;;  %vm318_vm0 = vcmask (!%p712_p8), 254976   ;;  %v352_v8 = vld [vmem:[%s1108_s1] sm:$0xff] (!%p712_p8)  ;;  %v354_v9 = vld [vmem:[%s1108_s1 + $0x8] sm:$0xff] (!%p712_p8)  ;;  %v356_v10 = vld [vmem:[%s1108_s1 + $0x10] sm:$0xff] (!%p712_p8)  ;;  %v910_v11 = vmov (!%p712_p8), 0.0  }
  0x23   : > { %319 = vst.msk [vmem:[#allocation2] sm:$0x3] (!%p712_p8), %vm318_vm0, %v910_v11  ;;  %353 = vst [vmem:[#allocation3] sm:$0xff] (!%p712_p8), %v352_v8  ;;  %v358_v12 = vld [vmem:[%s1108_s1 + $0x18] sm:$0xff] (!%p712_p8)  ;;  %v360_v13 = vld [vmem:[%s1108_s1 + $0x20] sm:$0xff] (!%p712_p8) }
  0x24   : > { %355 = vst [vmem:[#allocation3 + $0x8] sm:$0xff] (!%p712_p8), %v354_v9  ;;  %357 = vst [vmem:[#allocation3 + $0x10] sm:$0xff] (!%p712_p8), %v356_v10  ;;  %v362_v14 = vld [vmem:[%s1108_s1 + $0x28] sm:$0xff] (!%p712_p8)  ;;  %v364_v15 = vld [vmem:[%s1108_s1 + $0x30] sm:$0xff] (!%p712_p8) }
  0x25   : > { %359 = vst [vmem:[#allocation3 + $0x18] sm:$0xff] (!%p712_p8), %v358_v12  ;;  %361 = vst [vmem:[#allocation3 + $0x20] sm:$0xff] (!%p712_p8), %v360_v13  ;;  %v366_v16 = vld [vmem:[%s1108_s1 + $0x38] sm:$0xff] (!%p712_p8) }
  0x26   : > { %363 = vst [vmem:[#allocation3 + $0x28] sm:$0xff] (!%p712_p8), %v362_v14  ;;  %365 = vst [vmem:[#allocation3 + $0x30] sm:$0xff] (!%p712_p8), %v364_v15 }
  0x27   : > { %367 = vst [vmem:[#allocation3 + $0x38] sm:$0xff] (!%p712_p8), %v366_v16 }
  0x29   : > { %375 = vsyncadd [#allocation4], 1024 }
  0x2a PF: > { %v728_v17 = vld [vmem:[%s988_s14] sm:$0xff]   ;;  %v759_v18 = vld [vmem:[%s988_s14 + $0x8] sm:$0xff]   ;;  %v760_v22 = vld [vmem:[%s988_s14 + $0x10] sm:$0xff]   ;;  %vm409_vm1 = vcmask 261120   ;;  %vm454_vm2 = vcmask 1041409   ;;  %vm458_vm3 = vcmask 254976  }
  0x2b   : > { %v729_v19 = vunpack.c.l.bf16 %v728_v17  ;;  %v730_v20 = vunpack.c.h.bf16 %v728_v17  ;;  %v733_v21 = vunpack.c.l.bf16 %v759_v18  ;;  %v762_v23 = vld [vmem:[%s988_s14 + $0x20] sm:$0xff]   ;;  %v763_v24 = vld [vmem:[%s988_s14 + $0x28] sm:$0xff]   ;;  %v734_v25 = vunpack.c.h.bf16 %v759_v18  ;;  %v764_v29 = vld [vmem:[%s988_s14 + $0x30] sm:$0xff]   ;;  %p713_p9 = scmp.ne.s32.totalorder %s965_s24, 3 }
  0x2c   : > { %v745_v26 = vunpack.c.l.bf16 %v762_v23  ;;  %v746_v27 = vunpack.c.h.bf16 %v762_v23  ;;  %v749_v28 = vunpack.c.l.bf16 %v763_v24  ;;  %v737_v30 = vunpack.c.l.bf16 %v760_v22  ;;  %v761_v36 = vld [vmem:[%s988_s14 + $0x18] sm:$0xff]  }
  0x2d   : > { %v750_v31 = vunpack.c.h.bf16 %v763_v24  ;;  %v410_v32 = vsel %vm409_vm1, %v729_v19, 0.0  ;;  %v411_v33 = vsel %vm409_vm1, %v730_v20, 0.0  ;;  %v413_v34 = vsel %vm409_vm1, %v733_v21, 0.0  ;;  %v765_v43 = vld [vmem:[%s988_s14 + $0x38] sm:$0xff]  }
  0x2e   : > { %v738_v35 = vunpack.c.h.bf16 %v760_v22  ;;  %v753_v37 = vunpack.c.l.bf16 %v764_v29  ;;  %v412_v38 = vadd.f32 %v411_v33, %v410_v32  ;;  %v415_v39 = vsel %vm409_vm1, %v734_v25, 0.0  ;;  %v376_v18 = vld [vmem:[#allocation2] sm:$0x3] }
  0x2f   : > { %v431_v40 = vsel %vm409_vm1, %v745_v26, 0.0  ;;  %v432_v41 = vsel %vm409_vm1, %v746_v27, 0.0  ;;  %v434_v42 = vsel %vm409_vm1, %v749_v28, 0.0  ;;  %v741_v46 = vunpack.c.l.bf16 %v761_v36 }
  0x30   : > { %v414_v44 = vadd.f32 %v413_v34, %v412_v38  ;;  %v433_v45 = vadd.f32 %v432_v41, %v431_v40  ;;  %v754_v47 = vunpack.c.h.bf16 %v764_v29  ;;  %v417_v48 = vsel %vm409_vm1, %v737_v30, 0.0 }
  0x31   : > { %v436_v49 = vsel %vm409_vm1, %v750_v31, 0.0  ;;  %v742_v52 = vunpack.c.h.bf16 %v761_v36  ;;  %v757_v53 = vunpack.c.l.bf16 %v765_v43  ;;  %v419_v54 = vsel %vm409_vm1, %v738_v35, 0.0 }
  0x32   : > { %v416_v50 = vadd.f32 %v415_v39, %v414_v44  ;;  %v435_v51 = vadd.f32 %v434_v42, %v433_v45  ;;  %v438_v55 = vsel %vm409_vm1, %v753_v37, 0.0  ;;  %v758_v58 = vunpack.c.h.bf16 %v765_v43 }
  0x33   : > { %v421_v59 = vsel %vm409_vm1, %v741_v46, 0.0  ;;  %v440_v60 = vsel %vm409_vm1, %v754_v47, 0.0  ;;  %v423_v63 = vsel %vm409_vm1, %v742_v52, 0.0  ;;  %v442_v0 = vsel %vm409_vm1, %v757_v53, 0.0 }
  0x34   : > { %v418_v56 = vadd.f32 %v417_v48, %v416_v50  ;;  %v437_v57 = vadd.f32 %v436_v49, %v435_v51  ;;  %v444_v3 = vsel %vm409_vm1, %v758_v58, 0.0 }
  0x36   : > { %v420_v61 = vadd.f32 %v419_v54, %v418_v56  ;;  %v439_v62 = vadd.f32 %v438_v55, %v437_v57 }
  0x38   : > { %v422_v1 = vadd.f32 %v421_v59, %v420_v61  ;;  %v441_v2 = vadd.f32 %v440_v60, %v439_v62 }
  0x3a   : > { %v424_v4 = vadd.f32 %v423_v63, %v422_v1  ;;  %v443_v5 = vadd.f32 %v442_v0, %v441_v2 }
  0x3c   : > { %v425_v6 = vrot.slane %v424_v4, 4  ;;  %v445_v7 = vadd.f32 %v444_v3, %v443_v5 }
  0x3e   : > { %v426_v8 = vadd.f32 %v425_v6, %v424_v4  ;;  %v446_v9 = vrot.slane %v445_v7, 4 }
  0x40   : > { %v427_v10 = vrot.slane %v426_v8, 2  ;;  %v447_v11 = vadd.f32 %v446_v9, %v445_v7 }
  0x42   : > { %v428_v12 = vadd.f32 %v427_v10, %v426_v8  ;;  %v448_v13 = vrot.slane %v447_v11, 2 }
  0x44   : > { %v429_v14 = vrot.slane %v428_v12, 1  ;;  %v449_v15 = vadd.f32 %v448_v13, %v447_v11 }
  0x46   : > { %v430_v16 = vadd.f32 %v429_v14, %v428_v12  ;;  %v450_v17 = vrot.slane %v449_v15, 1 }
  0x47   : > { %463 = sbr.rel (%p713_p9) target bundleno = 398 (0x18e), region = 119 }
  0x48   : > { %v451_v19 = vadd.f32 %v450_v17, %v449_v15 }
  0x4a   : > { %v455_v20 = vsel %vm454_vm2, %v451_v19, %v430_v16 }
  0x4b   : > { %v457_v21 = vadd.f32 %v455_v20, %v376_v18 }
  0x4d   : > { %459 = vst.msk [vmem:[#allocation2] sm:$0x3] %vm458_vm3, %v457_v21 }
  0x4e   : > { %888 = dma.done.wait [#allocation4], 1024 }
  0x4f   : > { %889 = vsyncadd [#allocation4], 4294966272  ;;  %v911_v22 = vmov 0.0   ;;  %v471_v23 = vld [vmem:[#allocation3 + $0x8] sm:$0xff]  ;;  %v473_v24 = vld [vmem:[#allocation3 + $0x18] sm:$0xff]  ;;  %vm567_vm4 = vcmask 1041408  }
  0x50   : > { %545 = vmatprep.mubr.f32.mxu0 %v911_v22  ;;  %v470_v25 = vld [vmem:[#allocation3] sm:$0xff]  ;;  %v766_v26 = vpack.c.bf16 %v473_v24, %v471_v23  ;;  %v472_v27 = vld [vmem:[#allocation3 + $0x10] sm:$0xff]  ;;  %v475_v28 = vld [vmem:[#allocation3 + $0x28] sm:$0xff] }
  0x51   : > { %v477_v29 = vld [vmem:[#allocation3 + $0x38] sm:$0xff]  ;;  %v768_v30 = vpack.c.bf16 %v472_v27, %v470_v25  ;;  %v474_v32 = vld [vmem:[#allocation3 + $0x20] sm:$0xff]  ;;  %v476_v33 = vld [vmem:[#allocation3 + $0x30] sm:$0xff] }
  0x52   : > { %v770_v31 = vpack.c.bf16 %v477_v29, %v475_v28  ;;  %767 = vmatprep.subr.bf16.mxu0 %v766_v26  ;;  %v772_v36 = vpack.c.bf16 %v476_v33, %v474_v32  ;;  %v715_v42 = vld [vmem:[%s1109_s2] ss:$0 sm:$0xff] }
  0x53   : > { %769 = vmatpush1.bf16.msra.mxu0 %v768_v30  ;;  %v716_v3 = vld [vmem:[%s1110_s3] ss:$0 sm:$0xff] }
  0x54   : > { %v468_v34 = vld [vmem:[#allocation2] sm:$0x3]  ;;  %771 = vmatprep.subr.bf16.mxu0 %v770_v31 }
  0x55   : > { %v469_v35 = vmul.f32 0.00390625, %v468_v34  ;;  %v717_v5 = vld [vmem:[%s1111_s4] ss:$0 sm:$0xff] }
  0x57   : > { %v560_v37 = vmul.f32 %v469_v35, %v469_v35  ;;  %773 = vmatpush1.bf16.msra.mxu0 %v772_v36 }
  0x59   : > { %v561_v38 = vsel %vm458_vm3, %v560_v37, 0.0 }
  0x5a   : > { %562 = vadd.xlane.f32.xlu0 %v561_v38  ;;  %714 = vmatmul.mubr.msk.f32.vlgmr.msra.gmra.mrb[0].mxu0 %vm409_vm1, %v469_v35 }
  0xe7   : > { %v563_v39 = vpop.xlane.xlu0 %562 }
  0xe8   : > { %v564_v40 = vadd.f32 1e-12, %v563_v39 }
  0xea   : > { %814 = vrsqrt.f32 %v564_v40 }
  0xf4   : > { %v815_v41 = vpop.eup %814 }
 0x12d   : > { %v547_v43 = vpop.f32.mrb[0].mxu0 }
 0x12e   : > { %v566_v44 = vmul.f32 %v815_v41, %v547_v43  ;;  %v549_v45 = vpop.f32.mrb[1].mxu0 }
 0x12f   : > { %v559_v46 = vadd.f32 %v715_v42, %v549_v45 }
 0x130   : > { %615 = vst [vmem:[#allocation8] sm:$0x3] %v566_v44 }
 0x131   : > { %v568_v47 = vsel %vm567_vm4, %v559_v46, 0.0 }
 0x132   : > { %v569_v48 = vrot.slane %v568_v47, 4 }
 0x134   : > { %v570_v49 = vadd.f32 %v569_v48, %v568_v47 }
 0x136   : > { %v571_v50 = vrot.slane %v570_v49, 2 }
 0x138   : > { %v572_v51 = vadd.f32 %v571_v50, %v570_v49 }
 0x13a   : > { %v573_v52 = vrot.slane %v572_v51, 1 }
 0x13c   : > { %v574_v53 = vadd.f32 %v573_v52, %v572_v51 }
 0x13e   : > { %v576_v54 = vmul.f32 0.5, %v574_v53 }
 0x140   : > { %v577_v55 = vsub.f32 %v559_v46, %v576_v54 }
 0x142   : > { %v578_v56 = vmul.f32 %v577_v55, %v577_v55 }
 0x144   : > { %v579_v57 = vsel %vm567_vm4, %v578_v56, 0.0 }
 0x145   : > { %v580_v58 = vrot.slane %v579_v57, 4 }
 0x147   : > { %v581_v59 = vadd.f32 %v580_v58, %v579_v57 }
 0x149   : > { %v582_v60 = vrot.slane %v581_v59, 2 }
 0x14b   : > { %v583_v61 = vadd.f32 %v582_v60, %v581_v59 }
 0x14d   : > { %v584_v62 = vrot.slane %v583_v61, 1 }
 0x14f   : > { %v585_v63 = vadd.f32 %v584_v62, %v583_v61 }
 0x151   : > { %v586_v0 = vmul.f32 0.5, %v585_v63 }
 0x153   : > { %v587_v1 = vadd.f32 1e-05, %v586_v0 }
 0x155   : > { %816 = vrsqrt.f32 %v587_v1 }
 0x15f   : > { %v817_v2 = vpop.eup %816 }
 0x160   : > { %v589_v4 = vmul.f32 %v817_v2, %v577_v55 }
 0x162   : > { %v597_v6 = vmul.f32 %v716_v3, %v589_v4 }
 0x164   : > { %v605_v7 = vadd.f32 %v717_v5, %v597_v6 }
 0x166   : > { %v718_v8 = vmul.f32 -1.442695, %v605_v7 }
 0x168   : > { %818 = vpow2.f32 %v718_v8 }
 0x172   : > { %v819_v9 = vpop.eup %818 }
 0x173   : > { %v609_v10 = vadd.f32 1.0, %v819_v9 }
 0x175   : > { %820 = vrcp.f32 %v609_v10 }
 0x17f   : > { %v821_v11 = vpop.eup %820 }
 0x180   : > { %822 = vrcp.f32 %v821_v11 }
 0x18a   : > { %v823_v12 = vpop.eup %822 }
 0x18b   : > { %v613_v13 = vmul.f32 %v823_v12, %v566_v44 }
 0x18d   : > { %614 = vst [vmem:[#allocation6] sm:$0x3] %v613_v13 }
 0x18e PF: > { %p782_p10 = scmp.eq.s32.totalorder %s965_s24, 3  ;;  %s912_s17 = smov [#allocation6]  }
 0x18f   : > { %s623_s18 = sshll.u32 %s912_s17, 4  ;;  %s913_s19 = smov [#allocation8]   ;;  %s624_s18 = int_to_ptr.vmem [resolvable:$true] %s623_s18 }
 0x190   : > { %s634_s20 = sshll.u32 %s913_s19, 4  ;;  %s824_s21 = scalar_lea.vmem %s624_s18, 32  ;;  %s635_s20 = int_to_ptr.vmem [resolvable:$true] %s634_s20 }
 0x191   : > { %p825_p11 = scmp.ne.s32.totalorder %s624_s18, %s824_s21  ;;  %p831_p0 = scmp.lt.s32.totalorder %s624_s18, %s624_s18 }
 0x192   : > { %p832_p1 = scmp.lt.s32.totalorder %s824_s21, %s824_s21 }
 0x193   : > { %p826_p12 = pnand %p825_p11, %p782_p10 }
 0x194   : > { %p833_p2 = por %p832_p1, %p831_p0 }
 0x195   : > { %p827_p13 = pneg %p826_p12 }
 0x197   : > { %p834_p3 = pnand %p833_p2, %p827_p13 }
 0x199   : > { %837 = shalt.err (!%p834_p3)
}
 0x19a   : > { %s838_s27 = scalar_lea.hbm %s1112_s5, 32 }
 0x19b   : > { %p839_p4 = scmp.ne.s32.totalorder %s1112_s5, %s838_s27  ;;  %p844_p7 = scmp.lt.u32.totalorder %s838_s27, %s1112_s5 }
 0x19d   : > { %p840_p5 = pnand %p839_p4, %p782_p10 }
 0x19f   : > { %p841_p6 = pneg %p840_p5 }
 0x1a1   : > { %p846_p8 = pnand %p844_p7, %p841_p6 }
 0x1a3   : > { %849 = shalt.err (!%p846_p8)
}
 0x1a4   : > { %775 = dma.vmem_to_hbm [thread:$0]  (%p782_p10), %s624_s18, 32, %s1112_s5, [#allocation7]  }
 0x1a5   : > { %s850_s11 = scalar_lea.vmem %s635_s20, 32  ;;  %p857_p13 = scmp.lt.s32.totalorder %s635_s20, %s635_s20 }
 0x1a6   : > { %p851_p9 = scmp.ne.s32.totalorder %s635_s20, %s850_s11  ;;  %p858_p0 = scmp.lt.s32.totalorder %s850_s11, %s850_s11 }
 0x1a8   : > { %p852_p11 = pnand %p851_p9, %p782_p10  ;;  %p859_p1 = por %p858_p0, %p857_p13 }
 0x1aa   : > { %p853_p12 = pneg %p852_p11 }
 0x1ac   : > { %p860_p2 = pnand %p859_p1, %p853_p12 }
 0x1ae   : > { %863 = shalt.err (!%p860_p2)
}
 0x1af   : > { %s864_s14 = scalar_lea.hbm %s1113_s6, 32 }
 0x1b0   : > { %p865_p3 = scmp.ne.s32.totalorder %s1113_s6, %s864_s14  ;;  %p870_p6 = scmp.lt.u32.totalorder %s864_s14, %s1113_s6 }
 0x1b2   : > { %p866_p4 = pnand %p865_p3, %p782_p10 }
 0x1b4   : > { %p867_p5 = pneg %p866_p4 }
 0x1b6   : > { %p872_p7 = pnand %p870_p6, %p867_p5 }
 0x1b8   : > { %875 = shalt.err (!%p872_p7)
}
 0x1b9   : > { %777 = dma.vmem_to_hbm [thread:$0]  (%p782_p10), %s635_s20, 32, %s1113_s6, [#allocation9]  }
 0x1ba   : > { %891 = dma.done.wait (%p782_p10), [#allocation7], 32  }
 0x1bb   : > { %893 = vsyncadd (%p782_p10), [#allocation7], 4294967264 }
 0x1bc   : > { %895 = dma.done.wait (%p782_p10), [#allocation9], 32  }
 0x1bd   : > { %897 = vsyncadd (%p782_p10), [#allocation9], 4294967264 }
 0x1be PF: > { %p16_p8 = scmp.ge.s32.totalorder %s968_s25, 6   ;;  %s1114_s21 = smov %s904_s22 }
 0x1bf   : > { %s1115_s22 = smov %s977_s28  ;;  %s1116_s23 = smov %s968_s25 }
 0x1c0   :  { %18 = sbr.rel (!%p16_p8) target bundleno = 3 (0x3), region = 167 }
 0x1c7   :  { %651 = vsyncpa [#allocation7], 1 }
 0x1c8   :  { %653 = vsyncpa [#allocation7 + $0x1], 1 }
 0x1c9   :  { %654 = vsyncpa [#allocation9], 1 }
 0x1ca   :  { %655 = vsyncmov [#allocation4] }
 0x1cd   :  { %s656_s20 = vpop.sfrf %655 }
 0x1ce   :  { %p725_p9 = scmp.ne.s32.totalorder %s656_s20, 0 }
 0x1d0   :  { %660 = shalt.err (%p725_p9)  }

</bundles_post_ra>
